<compile_context>
chip_gen: v7x
topology: tpu7x:2x2x1
jax: 0.10.0
libtpu: 0.0.40
codegen_flags: <defaults>
</compile_context>

<pallas_src>
import functools
import math

import numpy as np
import jax
import jax.numpy as jnp
from jax.experimental import pallas as pl
from jax.experimental.pallas import tpu as pltpu

FEATURE_DIM = 2
HIDDEN_DIM = 32
OUT_DIM = 2
N_LAYERS = 1

_LANE = 128
_SUBLANE = 8


def _round_up(x, m):
    return (x + m - 1) // m * m


# ----------------------------------------------------------------------------- kernel
def _gru_kernel(x_ref,   # (T*B_pad, F_pad) f32: time-major, batch-padded, feature-padded inputs
                w_ref,   # (F_pad + 2H, lane) f32: [ W_ih^T packed | W_hh^T packed | W_out^T packed ]
                b_ref,   # (3, lane) f32: [ b_ih packed | b_hh packed | b_out packed ]
                out_ref,  # (B_pad, lane) f32
                *, hidden_dim, feature_pad, use_bf16):
    H = hidden_dim
    F_pad = feature_pad
    TB, _ = x_ref.shape
    B_pad, lane = out_ref.shape
    T = TB // B_pad

    mm_dtype = jnp.bfloat16 if use_bf16 else jnp.float32

    # Static, sublane-aligned weight slices (gate lane order: [n | r | z | 0...]).
    wih = w_ref[0:F_pad, :].astype(mm_dtype)                    # (F_pad, lane)
    whh = w_ref[F_pad:F_pad + H, :].astype(mm_dtype)            # (H, lane)
    wo = w_ref[F_pad + H:F_pad + 2 * H, :].astype(mm_dtype)     # (H, lane)

    # Hoist bias broadcasts out of the recurrence (JAX does not CSE them).
    bih = jnp.broadcast_to(b_ref[0:1, :], (TB, lane))
    bhh = jnp.broadcast_to(b_ref[1:2, :], (B_pad, lane))
    bo = jnp.broadcast_to(b_ref[2:3, :], (B_pad, lane))

    # All input projections at once, off the recurrence critical path:
    # gi[t*B_pad + b] = x[b, t] @ W_ih^T + b_ih   (lanes [n | r | z | 0...])
    gi = jnp.dot(x_ref[...].astype(mm_dtype), wih,
                 preferred_element_type=jnp.float32) + bih      # (T*B_pad, lane)

    h = jnp.zeros((B_pad, H), dtype=jnp.float32)
    # Fully unrolled recurrence (T is small & static); each step is one MXU push
    # plus one sigmoid stream and one tanh on the serial dependence chain.
    for t in range(T):
        gi_t = gi[t * B_pad:(t + 1) * B_pad, :]                 # static, aligned slice
        gh = jnp.dot(h.astype(mm_dtype), whh,
                     preferred_element_type=jnp.float32) + bhh  # (B_pad, lane)
        s = jax.nn.sigmoid(gi_t + gh)                           # full vreg; r,z in lanes H:3H
        r = s[:, H:2 * H]
        z = s[:, 2 * H:3 * H]
        # n lanes (0:H) are already aligned with h -> no lane rotate needed here.
        # PyTorch GRU: n = tanh(W_in x + b_in + r * (W_hn h + b_hn))
        n = jnp.tanh(gi_t[:, 0:H] + r * gh[:, 0:H])
        # h' = (1 - z) * n + z * h  ==  n + z * (h - n)   (one fewer VPU op)
        h = n + z * (h - n)

    # hidden2coord: lane-dense padded output (unmasked vst).
    out_ref[...] = jnp.dot(h.astype(mm_dtype), wo,
                           preferred_element_type=jnp.float32) + bo


# ----------------------------------------------------------------------------- params
def init_params(key, feature_dim, hidden_dim, out_dim):
    """Deterministic init mirroring the PyTorch module's parameter shapes."""
    keys = jax.random.split(key, 6)
    k_gru = 1.0 / math.sqrt(hidden_dim)
    w_ih = jax.random.uniform(keys[0], (3 * hidden_dim, feature_dim),
                              jnp.float32, -k_gru, k_gru)
    w_hh = jax.random.uniform(keys[1], (3 * hidden_dim, hidden_dim),
                              jnp.float32, -k_gru, k_gru)
    b_ih = jax.random.uniform(keys[2], (3 * hidden_dim,), jnp.float32, -k_gru, k_gru)
    b_hh = jax.random.uniform(keys[3], (3 * hidden_dim,), jnp.float32, -k_gru, k_gru)
    k_lin = 1.0 / math.sqrt(hidden_dim)
    w_out = jax.random.uniform(keys[4], (out_dim, hidden_dim),
                               jnp.float32, -k_lin, k_lin)
    b_out = jax.random.uniform(keys[5], (out_dim,), jnp.float32, -k_lin, k_lin)
    return dict(w_ih=w_ih, w_hh=w_hh, b_ih=b_ih, b_hh=b_hh,
                w_out=w_out, b_out=b_out)


def _pack_gate_cols(w, H, lane):
    """(3H, D) PyTorch gate-row order [r|z|n] -> (D, lane) lane order [n|r|z], zero-padded."""
    wt = jnp.asarray(w, jnp.float32).T                       # (D, 3H), cols [r|z|n]
    D = wt.shape[0]
    out = jnp.zeros((D, lane), jnp.float32)
    out = out.at[:, 0:H].set(wt[:, 2 * H:3 * H])             # n
    out = out.at[:, H:2 * H].set(wt[:, 0:H])                 # r
    out = out.at[:, 2 * H:3 * H].set(wt[:, H:2 * H])         # z
    return out


def _pack_gate_vec(b, H, lane):
    b = jnp.asarray(b, jnp.float32)
    out = jnp.zeros((lane,), jnp.float32)
    out = out.at[0:H].set(b[2 * H:3 * H])                    # n
    out = out.at[H:2 * H].set(b[0:H])                        # r
    out = out.at[2 * H:3 * H].set(b[H:2 * H])                # z
    return out


def prepare_params(params):
    """One-time repacking of the (PyTorch-layout) GRU + Linear weights.

    Returns lane-dense, gate-reordered arrays so the per-call forward does zero
    weight-side XLA work.
    """
    w_ih, w_hh = params["w_ih"], params["w_hh"]
    b_ih, b_hh = params["b_ih"], params["b_hh"]
    w_out, b_out = params["w_out"], params["b_out"]

    H = w_hh.shape[1]
    F = w_ih.shape[1]
    out_dim = w_out.shape[0]
    lane = _round_up(max(3 * H, out_dim), _LANE)
    F_pad = _round_up(F, _LANE)

    wih_p = jnp.zeros((F_pad, lane), jnp.float32).at[:F, :].set(
        _pack_gate_cols(w_ih, H, lane))                       # (F_pad, lane)
    whh_p = _pack_gate_cols(w_hh, H, lane)                    # (H, lane)
    wo_p = jnp.zeros((H, lane), jnp.float32).at[:, :out_dim].set(
        jnp.asarray(w_out, jnp.float32).T)                    # (H, lane)
    w_pack = jnp.concatenate([wih_p, whh_p, wo_p], axis=0)    # (F_pad + 2H, lane)

    bih_p = _pack_gate_vec(b_ih, H, lane)
    bhh_p = _pack_gate_vec(b_hh, H, lane)
    bo_p = jnp.zeros((lane,), jnp.float32).at[:out_dim].set(
        jnp.asarray(b_out, jnp.float32))
    b_pack = jnp.stack([bih_p, bhh_p, bo_p], axis=0)          # (3, lane)

    return dict(w_pack=jax.device_put(w_pack), b_pack=jax.device_put(b_pack))


# ----------------------------------------------------------------------------- forward
def gru_predictor_forward(x, w_pack, b_pack, *, hidden_dim, out_dim, use_bf16=False):
    """x: (B, T, F) float32  ->  (1, B, out_dim) float32 (matches PyTorch)."""
    B, T, F = x.shape
    lane = w_pack.shape[1]
    F_pad = w_pack.shape[0] - 2 * hidden_dim
    B_pad = _round_up(max(B, 1), _SUBLANE)

    # Single tiny wrapper fusion (transpose + pad + reshape); the input
    # projection itself happens inside the kernel, so no gi HBM round-trip.
    x_prep = jnp.transpose(x.astype(jnp.float32), (1, 0, 2))              # (T, B, F)
    x_prep = jnp.pad(x_prep, ((0, 0), (0, B_pad - B), (0, F_pad - F)))    # (T, B_pad, F_pad)
    x_prep = x_prep.reshape(T * B_pad, F_pad)                             # (T*B_pad, F_pad)

    kernel = functools.partial(_gru_kernel, hidden_dim=hidden_dim,
                               feature_pad=F_pad, use_bf16=use_bf16)

    out = pl.pallas_call(
        kernel,
        out_shape=jax.ShapeDtypeStruct((B_pad, lane), jnp.float32),
        in_specs=[pl.BlockSpec(memory_space=pltpu.MemorySpace.VMEM)] * 3,
        out_specs=pl.BlockSpec(memory_space=pltpu.MemorySpace.VMEM),
        compiler_params=pltpu.CompilerParams(
            # Let XLA fuse the x transpose/pad/reshape chain into the kernel input.
            allow_input_fusion=[True, False, False]),
    )(x_prep, w_pack, b_pack)

    return out[:B, :out_dim][None]  # (n_layers=1, B, out_dim)


# ----------------------------------------------------------------------------- reference
def _reference_forward(x, params):
    """Pure-JAX reference of the PyTorch GRUPredictor forward."""
    B, T, F = x.shape
    H = params["w_hh"].shape[1]
    w_ih, w_hh = params["w_ih"], params["w_hh"]
    b_ih, b_hh = params["b_ih"], params["b_hh"]
    h = jnp.zeros((B, H), jnp.float32)
    for t in range(T):
        x_t = x[:, t, :]
        gi = x_t @ w_ih.T + b_ih
        gh = h @ w_hh.T + b_hh
        r = jax.nn.sigmoid(gi[:, :H] + gh[:, :H])
        z = jax.nn.sigmoid(gi[:, H:2 * H] + gh[:, H:2 * H])
        n = jnp.tanh(gi[:, 2 * H:] + r * gh[:, 2 * H:])
        h = (1.0 - z) * n + z * h
    out = h @ params["w_out"].T + params["b_out"]
    return out[None]


if __name__ == "__main__":
    B, T = 2, 8
    key = jax.random.PRNGKey(0)
    k_x, k_p = jax.random.split(key)
    x = jax.random.normal(k_x, (B, T, FEATURE_DIM), dtype=jnp.float32)
    params = init_params(k_p, FEATURE_DIM, HIDDEN_DIM, OUT_DIM)

    packed = prepare_params(params)  # one-time weight packing, outside the jit

    fwd = jax.jit(gru_predictor_forward,
                  static_argnames=("hidden_dim", "out_dim", "use_bf16"))
    out = fwd(x, packed["w_pack"], packed["b_pack"],
              hidden_dim=HIDDEN_DIM, out_dim=OUT_DIM, use_bf16=False)
    out = jax.block_until_ready(out)

    ref = _reference_forward(x, params)
    assert out.shape == (N_LAYERS, B, OUT_DIM), out.shape
    np.testing.assert_allclose(np.asarray(out), np.asarray(ref),
                               rtol=1e-5, atol=1e-5)
    print("KERNEL_OK")
</pallas_src>

<mosaic_0001>
module attributes {stable_mosaic.version = 11 : i64} {
  func.func @_gru_kernel(%arg0: memref<64x128xf32, #tpu.memory_space<vmem>>, %arg1: memref<192x128xf32, #tpu.memory_space<vmem>>, %arg2: memref<3x128xf32, #tpu.memory_space<vmem>>, %arg3: memref<8x128xf32, #tpu.memory_space<vmem>>) attributes {dimension_semantics = [], scalar_prefetch = 0 : i64, scratch_operands = 0 : i64, tpu.core_type = #tpu.core_type<tc>} {
    %c0 = arith.constant 0 : index
    %c0_0 = arith.constant 0 : index
    %0 = vector.load %arg1[%c0, %c0_0] : memref<192x128xf32, #tpu.memory_space<vmem>>, vector<128x128xf32>
    %c128 = arith.constant 128 : index
    %c0_1 = arith.constant 0 : index
    %1 = vector.load %arg1[%c128, %c0_1] : memref<192x128xf32, #tpu.memory_space<vmem>>, vector<32x128xf32>
    %c160 = arith.constant 160 : index
    %c0_2 = arith.constant 0 : index
    %2 = vector.load %arg1[%c160, %c0_2] : memref<192x128xf32, #tpu.memory_space<vmem>>, vector<32x128xf32>
    %c0_3 = arith.constant 0 : index
    %c0_4 = arith.constant 0 : index
    %3 = vector.load %arg2[%c0_3, %c0_4] : memref<3x128xf32, #tpu.memory_space<vmem>>, vector<1x128xf32>
    %4 = vector.shape_cast %3 : vector<1x128xf32> to vector<1x128xf32>
    %5 = vector.broadcast %4 : vector<1x128xf32> to vector<64x128xf32>
    %c1 = arith.constant 1 : index
    %c0_5 = arith.constant 0 : index
    %6 = vector.load %arg2[%c1, %c0_5] : memref<3x128xf32, #tpu.memory_space<vmem>>, vector<1x128xf32>
    %7 = vector.shape_cast %6 : vector<1x128xf32> to vector<1x128xf32>
    %8 = vector.broadcast %7 : vector<1x128xf32> to vector<8x128xf32>
    %c2 = arith.constant 2 : index
    %c0_6 = arith.constant 0 : index
    %9 = vector.load %arg2[%c2, %c0_6] : memref<3x128xf32, #tpu.memory_space<vmem>>, vector<1x128xf32>
    %10 = vector.shape_cast %9 : vector<1x128xf32> to vector<1x128xf32>
    %11 = vector.broadcast %10 : vector<1x128xf32> to vector<8x128xf32>
    %c0_7 = arith.constant 0 : index
    %c0_8 = arith.constant 0 : index
    %12 = vector.load %arg0[%c0_7, %c0_8] : memref<64x128xf32, #tpu.memory_space<vmem>>, vector<64x128xf32>
    %cst = arith.constant dense<0.000000e+00> : vector<64x128xf32>
    %13 = tpu.matmul %12, %0, %cst {dimension_numbers = #tpu.dot_dimension_numbers<[1], [0], [0], [1], [0, 0, 1, 1], [], []>} : vector<64x128xf32>, vector<128x128xf32>, vector<64x128xf32> -> vector<64x128xf32>
    %14 = arith.addf %13, %5 : vector<64x128xf32>
    %cst_9 = arith.constant 0.000000e+00 : f32
    %15 = vector.broadcast %cst_9 : f32 to vector<8x32xf32>
    %16 = vector.extract_strided_slice %14 {offsets = [0, 0], sizes = [8, 128], strides = [1, 1]} : vector<64x128xf32> to vector<8x128xf32>
    %cst_10 = arith.constant dense<0.000000e+00> : vector<8x128xf32>
    %17 = tpu.matmul %15, %1, %cst_10 {dimension_numbers = #tpu.dot_dimension_numbers<[1], [0], [0], [1], [0, 0, 1, 1], [], []>} : vector<8x32xf32>, vector<32x128xf32>, vector<8x128xf32> -> vector<8x128xf32>
    %18 = arith.addf %17, %8 : vector<8x128xf32>
    %19 = arith.addf %16, %18 : vector<8x128xf32>
    %20 = arith.negf %19 : vector<8x128xf32>
    %21 = math.exp %20 : vector<8x128xf32>
    %cst_11 = arith.constant 1.000000e+00 : f32
    %22 = vector.broadcast %cst_11 : f32 to vector<8x128xf32>
    %23 = arith.addf %22, %21 : vector<8x128xf32>
    %24 = arith.divf %22, %23 : vector<8x128xf32>
    %25 = vector.extract_strided_slice %24 {offsets = [0, 32], sizes = [8, 32], strides = [1, 1]} : vector<8x128xf32> to vector<8x32xf32>
    %26 = vector.extract_strided_slice %24 {offsets = [0, 64], sizes = [8, 32], strides = [1, 1]} : vector<8x128xf32> to vector<8x32xf32>
    %27 = vector.extract_strided_slice %16 {offsets = [0, 0], sizes = [8, 32], strides = [1, 1]} : vector<8x128xf32> to vector<8x32xf32>
    %28 = vector.extract_strided_slice %18 {offsets = [0, 0], sizes = [8, 32], strides = [1, 1]} : vector<8x128xf32> to vector<8x32xf32>
    %29 = arith.mulf %25, %28 : vector<8x32xf32>
    %30 = arith.addf %27, %29 : vector<8x32xf32>
    %31 = math.tanh %30 : vector<8x32xf32>
    %32 = arith.subf %15, %31 : vector<8x32xf32>
    %33 = arith.mulf %26, %32 : vector<8x32xf32>
    %34 = arith.addf %31, %33 : vector<8x32xf32>
    %35 = vector.extract_strided_slice %14 {offsets = [8, 0], sizes = [8, 128], strides = [1, 1]} : vector<64x128xf32> to vector<8x128xf32>
    %cst_12 = arith.constant dense<0.000000e+00> : vector<8x128xf32>
    %36 = tpu.matmul %34, %1, %cst_12 {dimension_numbers = #tpu.dot_dimension_numbers<[1], [0], [0], [1], [0, 0, 1, 1], [], []>} : vector<8x32xf32>, vector<32x128xf32>, vector<8x128xf32> -> vector<8x128xf32>
    %37 = arith.addf %36, %8 : vector<8x128xf32>
    %38 = arith.addf %35, %37 : vector<8x128xf32>
    %39 = arith.negf %38 : vector<8x128xf32>
    %40 = math.exp %39 : vector<8x128xf32>
    %cst_13 = arith.constant 1.000000e+00 : f32
    %41 = vector.broadcast %cst_13 : f32 to vector<8x128xf32>
    %42 = arith.addf %41, %40 : vector<8x128xf32>
    %43 = arith.divf %41, %42 : vector<8x128xf32>
    %44 = vector.extract_strided_slice %43 {offsets = [0, 32], sizes = [8, 32], strides = [1, 1]} : vector<8x128xf32> to vector<8x32xf32>
    %45 = vector.extract_strided_slice %43 {offsets = [0, 64], sizes = [8, 32], strides = [1, 1]} : vector<8x128xf32> to vector<8x32xf32>
    %46 = vector.extract_strided_slice %35 {offsets = [0, 0], sizes = [8, 32], strides = [1, 1]} : vector<8x128xf32> to vector<8x32xf32>
    %47 = vector.extract_strided_slice %37 {offsets = [0, 0], sizes = [8, 32], strides = [1, 1]} : vector<8x128xf32> to vector<8x32xf32>
    %48 = arith.mulf %44, %47 : vector<8x32xf32>
    %49 = arith.addf %46, %48 : vector<8x32xf32>
    %50 = math.tanh %49 : vector<8x32xf32>
    %51 = arith.subf %34, %50 : vector<8x32xf32>
    %52 = arith.mulf %45, %51 : vector<8x32xf32>
    %53 = arith.addf %50, %52 : vector<8x32xf32>
    %54 = vector.extract_strided_slice %14 {offsets = [16, 0], sizes = [8, 128], strides = [1, 1]} : vector<64x128xf32> to vector<8x128xf32>
    %cst_14 = arith.constant dense<0.000000e+00> : vector<8x128xf32>
    %55 = tpu.matmul %53, %1, %cst_14 {dimension_numbers = #tpu.dot_dimension_numbers<[1], [0], [0], [1], [0, 0, 1, 1], [], []>} : vector<8x32xf32>, vector<32x128xf32>, vector<8x128xf32> -> vector<8x128xf32>
    %56 = arith.addf %55, %8 : vector<8x128xf32>
    %57 = arith.addf %54, %56 : vector<8x128xf32>
    %58 = arith.negf %57 : vector<8x128xf32>
    %59 = math.exp %58 : vector<8x128xf32>
    %cst_15 = arith.constant 1.000000e+00 : f32
    %60 = vector.broadcast %cst_15 : f32 to vector<8x128xf32>
    %61 = arith.addf %60, %59 : vector<8x128xf32>
    %62 = arith.divf %60, %61 : vector<8x128xf32>
    %63 = vector.extract_strided_slice %62 {offsets = [0, 32], sizes = [8, 32], strides = [1, 1]} : vector<8x128xf32> to vector<8x32xf32>
    %64 = vector.extract_strided_slice %62 {offsets = [0, 64], sizes = [8, 32], strides = [1, 1]} : vector<8x128xf32> to vector<8x32xf32>
    %65 = vector.extract_strided_slice %54 {offsets = [0, 0], sizes = [8, 32], strides = [1, 1]} : vector<8x128xf32> to vector<8x32xf32>
    %66 = vector.extract_strided_slice %56 {offsets = [0, 0], sizes = [8, 32], strides = [1, 1]} : vector<8x128xf32> to vector<8x32xf32>
    %67 = arith.mulf %63, %66 : vector<8x32xf32>
    %68 = arith.addf %65, %67 : vector<8x32xf32>
    %69 = math.tanh %68 : vector<8x32xf32>
    %70 = arith.subf %53, %69 : vector<8x32xf32>
    %71 = arith.mulf %64, %70 : vector<8x32xf32>
    %72 = arith.addf %69, %71 : vector<8x32xf32>
    %73 = vector.extract_strided_slice %14 {offsets = [24, 0], sizes = [8, 128], strides = [1, 1]} : vector<64x128xf32> to vector<8x128xf32>
    %cst_16 = arith.constant dense<0.000000e+00> : vector<8x128xf32>
    %74 = tpu.matmul %72, %1, %cst_16 {dimension_numbers = #tpu.dot_dimension_numbers<[1], [0], [0], [1], [0, 0, 1, 1], [], []>} : vector<8x32xf32>, vector<32x128xf32>, vector<8x128xf32> -> vector<8x128xf32>
    %75 = arith.addf %74, %8 : vector<8x128xf32>
    %76 = arith.addf %73, %75 : vector<8x128xf32>
    %77 = arith.negf %76 : vector<8x128xf32>
    %78 = math.exp %77 : vector<8x128xf32>
    %cst_17 = arith.constant 1.000000e+00 : f32
    %79 = vector.broadcast %cst_17 : f32 to vector<8x128xf32>
    %80 = arith.addf %79, %78 : vector<8x128xf32>
    %81 = arith.divf %79, %80 : vector<8x128xf32>
    %82 = vector.extract_strided_slice %81 {offsets = [0, 32], sizes = [8, 32], strides = [1, 1]} : vector<8x128xf32> to vector<8x32xf32>
    %83 = vector.extract_strided_slice %81 {offsets = [0, 64], sizes = [8, 32], strides = [1, 1]} : vector<8x128xf32> to vector<8x32xf32>
    %84 = vector.extract_strided_slice %73 {offsets = [0, 0], sizes = [8, 32], strides = [1, 1]} : vector<8x128xf32> to vector<8x32xf32>
    %85 = vector.extract_strided_slice %75 {offsets = [0, 0], sizes = [8, 32], strides = [1, 1]} : vector<8x128xf32> to vector<8x32xf32>
    %86 = arith.mulf %82, %85 : vector<8x32xf32>
    %87 = arith.addf %84, %86 : vector<8x32xf32>
    %88 = math.tanh %87 : vector<8x32xf32>
    %89 = arith.subf %72, %88 : vector<8x32xf32>
    %90 = arith.mulf %83, %89 : vector<8x32xf32>
    %91 = arith.addf %88, %90 : vector<8x32xf32>
    %92 = vector.extract_strided_slice %14 {offsets = [32, 0], sizes = [8, 128], strides = [1, 1]} : vector<64x128xf32> to vector<8x128xf32>
    %cst_18 = arith.constant dense<0.000000e+00> : vector<8x128xf32>
    %93 = tpu.matmul %91, %1, %cst_18 {dimension_numbers = #tpu.dot_dimension_numbers<[1], [0], [0], [1], [0, 0, 1, 1], [], []>} : vector<8x32xf32>, vector<32x128xf32>, vector<8x128xf32> -> vector<8x128xf32>
    %94 = arith.addf %93, %8 : vector<8x128xf32>
    %95 = arith.addf %92, %94 : vector<8x128xf32>
    %96 = arith.negf %95 : vector<8x128xf32>
    %97 = math.exp %96 : vector<8x128xf32>
    %cst_19 = arith.constant 1.000000e+00 : f32
    %98 = vector.broadcast %cst_19 : f32 to vector<8x128xf32>
    %99 = arith.addf %98, %97 : vector<8x128xf32>
    %100 = arith.divf %98, %99 : vector<8x128xf32>
    %101 = vector.extract_strided_slice %100 {offsets = [0, 32], sizes = [8, 32], strides = [1, 1]} : vector<8x128xf32> to vector<8x32xf32>
    %102 = vector.extract_strided_slice %100 {offsets = [0, 64], sizes = [8, 32], strides = [1, 1]} : vector<8x128xf32> to vector<8x32xf32>
    %103 = vector.extract_strided_slice %92 {offsets = [0, 0], sizes = [8, 32], strides = [1, 1]} : vector<8x128xf32> to vector<8x32xf32>
    %104 = vector.extract_strided_slice %94 {offsets = [0, 0], sizes = [8, 32], strides = [1, 1]} : vector<8x128xf32> to vector<8x32xf32>
    %105 = arith.mulf %101, %104 : vector<8x32xf32>
    %106 = arith.addf %103, %105 : vector<8x32xf32>
    %107 = math.tanh %106 : vector<8x32xf32>
    %108 = arith.subf %91, %107 : vector<8x32xf32>
    %109 = arith.mulf %102, %108 : vector<8x32xf32>
    %110 = arith.addf %107, %109 : vector<8x32xf32>
    %111 = vector.extract_strided_slice %14 {offsets = [40, 0], sizes = [8, 128], strides = [1, 1]} : vector<64x128xf32> to vector<8x128xf32>
    %cst_20 = arith.constant dense<0.000000e+00> : vector<8x128xf32>
    %112 = tpu.matmul %110, %1, %cst_20 {dimension_numbers = #tpu.dot_dimension_numbers<[1], [0], [0], [1], [0, 0, 1, 1], [], []>} : vector<8x32xf32>, vector<32x128xf32>, vector<8x128xf32> -> vector<8x128xf32>
    %113 = arith.addf %112, %8 : vector<8x128xf32>
    %114 = arith.addf %111, %113 : vector<8x128xf32>
    %115 = arith.negf %114 : vector<8x128xf32>
    %116 = math.exp %115 : vector<8x128xf32>
    %cst_21 = arith.constant 1.000000e+00 : f32
    %117 = vector.broadcast %cst_21 : f32 to vector<8x128xf32>
    %118 = arith.addf %117, %116 : vector<8x128xf32>
    %119 = arith.divf %117, %118 : vector<8x128xf32>
    %120 = vector.extract_strided_slice %119 {offsets = [0, 32], sizes = [8, 32], strides = [1, 1]} : vector<8x128xf32> to vector<8x32xf32>
    %121 = vector.extract_strided_slice %119 {offsets = [0, 64], sizes = [8, 32], strides = [1, 1]} : vector<8x128xf32> to vector<8x32xf32>
    %122 = vector.extract_strided_slice %111 {offsets = [0, 0], sizes = [8, 32], strides = [1, 1]} : vector<8x128xf32> to vector<8x32xf32>
    %123 = vector.extract_strided_slice %113 {offsets = [0, 0], sizes = [8, 32], strides = [1, 1]} : vector<8x128xf32> to vector<8x32xf32>
    %124 = arith.mulf %120, %123 : vector<8x32xf32>
    %125 = arith.addf %122, %124 : vector<8x32xf32>
    %126 = math.tanh %125 : vector<8x32xf32>
    %127 = arith.subf %110, %126 : vector<8x32xf32>
    %128 = arith.mulf %121, %127 : vector<8x32xf32>
    %129 = arith.addf %126, %128 : vector<8x32xf32>
    %130 = vector.extract_strided_slice %14 {offsets = [48, 0], sizes = [8, 128], strides = [1, 1]} : vector<64x128xf32> to vector<8x128xf32>
    %cst_22 = arith.constant dense<0.000000e+00> : vector<8x128xf32>
    %131 = tpu.matmul %129, %1, %cst_22 {dimension_numbers = #tpu.dot_dimension_numbers<[1], [0], [0], [1], [0, 0, 1, 1], [], []>} : vector<8x32xf32>, vector<32x128xf32>, vector<8x128xf32> -> vector<8x128xf32>
    %132 = arith.addf %131, %8 : vector<8x128xf32>
    %133 = arith.addf %130, %132 : vector<8x128xf32>
    %134 = arith.negf %133 : vector<8x128xf32>
    %135 = math.exp %134 : vector<8x128xf32>
    %cst_23 = arith.constant 1.000000e+00 : f32
    %136 = vector.broadcast %cst_23 : f32 to vector<8x128xf32>
    %137 = arith.addf %136, %135 : vector<8x128xf32>
    %138 = arith.divf %136, %137 : vector<8x128xf32>
    %139 = vector.extract_strided_slice %138 {offsets = [0, 32], sizes = [8, 32], strides = [1, 1]} : vector<8x128xf32> to vector<8x32xf32>
    %140 = vector.extract_strided_slice %138 {offsets = [0, 64], sizes = [8, 32], strides = [1, 1]} : vector<8x128xf32> to vector<8x32xf32>
    %141 = vector.extract_strided_slice %130 {offsets = [0, 0], sizes = [8, 32], strides = [1, 1]} : vector<8x128xf32> to vector<8x32xf32>
    %142 = vector.extract_strided_slice %132 {offsets = [0, 0], sizes = [8, 32], strides = [1, 1]} : vector<8x128xf32> to vector<8x32xf32>
    %143 = arith.mulf %139, %142 : vector<8x32xf32>
    %144 = arith.addf %141, %143 : vector<8x32xf32>
    %145 = math.tanh %144 : vector<8x32xf32>
    %146 = arith.subf %129, %145 : vector<8x32xf32>
    %147 = arith.mulf %140, %146 : vector<8x32xf32>
    %148 = arith.addf %145, %147 : vector<8x32xf32>
    %149 = vector.extract_strided_slice %14 {offsets = [56, 0], sizes = [8, 128], strides = [1, 1]} : vector<64x128xf32> to vector<8x128xf32>
    %cst_24 = arith.constant dense<0.000000e+00> : vector<8x128xf32>
    %150 = tpu.matmul %148, %1, %cst_24 {dimension_numbers = #tpu.dot_dimension_numbers<[1], [0], [0], [1], [0, 0, 1, 1], [], []>} : vector<8x32xf32>, vector<32x128xf32>, vector<8x128xf32> -> vector<8x128xf32>
    %151 = arith.addf %150, %8 : vector<8x128xf32>
    %152 = arith.addf %149, %151 : vector<8x128xf32>
    %153 = arith.negf %152 : vector<8x128xf32>
    %154 = math.exp %153 : vector<8x128xf32>
    %cst_25 = arith.constant 1.000000e+00 : f32
    %155 = vector.broadcast %cst_25 : f32 to vector<8x128xf32>
    %156 = arith.addf %155, %154 : vector<8x128xf32>
    %157 = arith.divf %155, %156 : vector<8x128xf32>
    %158 = vector.extract_strided_slice %157 {offsets = [0, 32], sizes = [8, 32], strides = [1, 1]} : vector<8x128xf32> to vector<8x32xf32>
    %159 = vector.extract_strided_slice %157 {offsets = [0, 64], sizes = [8, 32], strides = [1, 1]} : vector<8x128xf32> to vector<8x32xf32>
    %160 = vector.extract_strided_slice %149 {offsets = [0, 0], sizes = [8, 32], strides = [1, 1]} : vector<8x128xf32> to vector<8x32xf32>
    %161 = vector.extract_strided_slice %151 {offsets = [0, 0], sizes = [8, 32], strides = [1, 1]} : vector<8x128xf32> to vector<8x32xf32>
    %162 = arith.mulf %158, %161 : vector<8x32xf32>
    %163 = arith.addf %160, %162 : vector<8x32xf32>
    %164 = math.tanh %163 : vector<8x32xf32>
    %165 = arith.subf %148, %164 : vector<8x32xf32>
    %166 = arith.mulf %159, %165 : vector<8x32xf32>
    %167 = arith.addf %164, %166 : vector<8x32xf32>
    %cst_26 = arith.constant dense<0.000000e+00> : vector<8x128xf32>
    %168 = tpu.matmul %167, %2, %cst_26 {dimension_numbers = #tpu.dot_dimension_numbers<[1], [0], [0], [1], [0, 0, 1, 1], [], []>} : vector<8x32xf32>, vector<32x128xf32>, vector<8x128xf32> -> vector<8x128xf32>
    %169 = arith.addf %168, %11 : vector<8x128xf32>
    %c0_27 = arith.constant 0 : index
    %c0_28 = arith.constant 0 : index
    %170 = vector.load %arg3[%c0_27, %c0_28] : memref<8x128xf32, #tpu.memory_space<vmem>>, vector<8x128xf32>
    tpu.vector_store %arg3[%c0_27, %c0_28], %169 {strides = array<i32>} : memref<8x128xf32, #tpu.memory_space<vmem>>, vector<8x128xf32>,
    return
  }
}

</mosaic_0001>

<bundles_post_ra>
// kernel: gru_predictor_forward.2
= control target key start
LH: loop header
LB: loop body
LE: loop exit
PB: predicated region body
PF: predicated region fallthrough
CT: control target
= control target key end

     0   :  { %s1862_s0 = inlined_call_operand.hbm [shape: f32[192,128], index: 0, kind: input, shape index: {}]   ;;  %s1863_s1 = inlined_call_operand.vmem [shape: f32[3,128], index: 1, kind: input, shape index: {}]   ;;  %s1864_s2 = inlined_call_operand.vmem [shape: f32[8,2,2], index: 2, kind: input, shape index: {}]   ;;  %s1865_s3 = inlined_call_operand.<no memory space> [shape: f32[], index: 3, kind: input, shape index: {}]   ;;  %s1866_s4 = inlined_call_operand.vmem [shape: f32[8,128], index: 4, kind: output, shape index: {}]  }
   0x1   :  { %v1638_v0 = vstv %s1865_s3 }
   0x2   :  { %10 = vsyncpa [#allocation8], 0  ;;  %s1601_s17 = smov [#allocation7]   ;;  %s1577_s21 = scalar_lea.hbm %s1862_s0, 3072 }
   0x3   :  { %s18_s18 = sshll.u32 %s1601_s17, 4  ;;  %p1578_p0 = scmp.ne.s32.totalorder %s1862_s0, %s1577_s21  ;;  %s19_s18 = int_to_ptr.vmem [resolvable:$true] %s18_s18 }
   0x4   :  { %p1581_p1 = scmp.lt.u32.totalorder %s1577_s21, %s1862_s0 }
   0x6   :  { %p1583_p2 = pnand %p1581_p1, %p1578_p0 }
   0x8   :  { %1586 = shalt.err (!%p1583_p2)
}
   0x9   :  { %s1587_s3 = scalar_lea.vmem %s19_s18, 3072  ;;  %p1592_p4 = scmp.lt.s32.totalorder %s19_s18, %s19_s18 }
   0xa   :  { %p1588_p3 = scmp.ne.s32.totalorder %s19_s18, %s1587_s3  ;;  %p1593_p5 = scmp.lt.s32.totalorder %s1587_s3, %s1587_s3 }
   0xc   :  { %p1594_p6 = por %p1593_p5, %p1592_p4 }
   0xe   :  { %p1595_p7 = pnand %p1594_p6, %p1588_p3 }
  0x10   :  { %1598 = shalt.err (!%p1595_p7)
}
  0x11   :  { %s1602_s26 = smov 128   ;;  %s1603_s27 = smov 8  }
  0x12   :  { %24 = dma.hbm_to_vmem [thread:$0]  %s1862_s0, 3072, %s19_s18, [#allocation8], %s1602_s26, %s1602_s26, %s1603_s27  }
  0x13   :  { %1599 = dma.done.wait [#allocation8], 3072  }
  0x14   :  { %1600 = vsyncadd [#allocation8], 4294964224  ;;  %v1604_v1 = vmov 0.0|0.0   ;;  %vm1605_vm0 = vmmov 0   ;;  %v1606_v2 = vmov 0.0   ;;  %v31_v3 = vlaneseq  ;;  %v148_v4 = vld [vmem:[#allocation7] sm:$0xff] }
  0x15   :  { %1466 = vmatprep.subr.bf16.mxu1 %v1604_v1  ;;  %1343 = vmatprep.mubr.msk.f32.mxu1 %vm1605_vm0, %v1606_v2  ;;  %v149_v5 = vld [vmem:[#allocation7 + $0x8] sm:$0xff]  ;;  %v164_v6 = vld [vmem:[#allocation7 + $0x80] sm:$0xff]  ;;  %v150_v10 = vld [vmem:[#allocation7 + $0x10] sm:$0xff]  ;;  %s1607_s9 = smov 32   ;;  %s1608_s12 = smov 96   ;;  %vm300_vm3 = vcmask 261120  }
  0x16   :  { %v1655_v7 = vshrl.u32 %v31_v3, 7  ;;  %v1434_v8 = vpack.c.bf16 %v149_v5, %v148_v4  ;;  %v165_v9 = vld [vmem:[#allocation7 + $0x88] sm:$0xff]  ;;  %v151_v11 = vld [vmem:[#allocation7 + $0x18] sm:$0xff]  ;;  %v1657_v12 = vand.u32 127, %v31_v3  ;;  %v166_v15 = vld [vmem:[#allocation7 + $0x90] sm:$0xff]  ;;  %s1609_s13 = smov 64  }
  0x17   :  { %v1659_v13 = vpack.c.bf16 %v165_v9, %v164_v6  ;;  %v1438_v14 = vpack.c.bf16 %v151_v11, %v150_v10  ;;  %v167_v16 = vld [vmem:[#allocation7 + $0x98] sm:$0xff]  ;;  %v152_v17 = vld [vmem:[#allocation7 + $0x20] sm:$0xff]  ;;  %v153_v18 = vld [vmem:[#allocation7 + $0x28] sm:$0xff] }
  0x18   :  { %1435 = vmatprep.subr.bf16.mxu0 %v1434_v8  ;;  %v1662_v19 = vpack.c.bf16 %v167_v16, %v166_v15  ;;  %vm34_vm1 = vcmp.lt.s32.totalorder %v1655_v7, 2  ;;  %v1442_v20 = vpack.c.bf16 %v153_v18, %v152_v17  ;;  %vm39_vm2 = vcmp.lt.s32.totalorder %v1657_v12, 2  ;;  %v154_v21 = vld [vmem:[#allocation7 + $0x30] sm:$0xff]  ;;  %v155_v22 = vld [vmem:[#allocation7 + $0x38] sm:$0xff]  ;;  %v30_v23 = vld [vmem:[%s1864_s2] sm:$0x3] }
  0x19   :  { %1468 = vmatpush3.bf16.msra.mxu1 %v1659_v13  ;;  %1437 = vmatpush3.bf16.msra.mxu0 %v1434_v8  ;;  %v35_v24 = vsel %vm34_vm1, %v30_v23, %v1638_v0  ;;  %v1446_v26 = vpack.c.bf16 %v155_v22, %v154_v21  ;;  %v156_v27 = vld [vmem:[#allocation7 + $0x40] sm:$0xff]  ;;  %v157_v28 = vld [vmem:[#allocation7 + $0x48] sm:$0xff]  ;;  %v158_v30 = vld [vmem:[#allocation7 + $0x50] sm:$0xff] }
  0x1a   :  { %1469 = vmatprep.subr.bf16.mxu1 %v1604_v1  ;;  %1439 = vmatprep.subr.bf16.mxu0 %v1438_v14  ;;  %v40_v25 = vsel %vm39_vm2, %v35_v24, %v1638_v0  ;;  %v1450_v29 = vpack.c.bf16 %v157_v28, %v156_v27  ;;  %v159_v31 = vld [vmem:[#allocation7 + $0x58] sm:$0xff]  ;;  %v160_v33 = vld [vmem:[#allocation7 + $0x60] sm:$0xff]  ;;  %v161_v34 = vld [vmem:[#allocation7 + $0x68] sm:$0xff] }
  0x1b   :  { %1323 = vmatprep.mubr.f32.mxu0 %v40_v25  ;;  %v1454_v32 = vpack.c.bf16 %v159_v31, %v158_v30  ;;  %v1458_v35 = vpack.c.bf16 %v161_v34, %v160_v33  ;;  %v162_v36 = vld [vmem:[#allocation7 + $0x70] sm:$0xff]  ;;  %v163_v37 = vld [vmem:[#allocation7 + $0x78] sm:$0xff]  ;;  %v1196_v39 = vld [vmem:[%s1864_s2 + $0x2] sm:$0x3] }
  0x1c   :  { %v1462_v38 = vpack.c.bf16 %v163_v37, %v162_v36  ;;  %v49_v40 = vsel %vm34_vm1, %v1196_v39, %v1638_v0  ;;  %v1702_v42 = vld [vmem:[%s1863_s1 + $0x1] ss:$0 sm:$0xff]  ;;  %v1709_v48 = vld [vmem:[%s1863_s1] ss:$0 sm:$0xff]  ;;  %v1197_v23 = vld [vmem:[%s1864_s2 + $0x4] sm:$0x3] }
  0x1d   :  { %1471 = vmatpush3.bf16.msra.mxu1 %v1662_v19  ;;  %1441 = vmatpush3.bf16.msra.mxu0 %v1438_v14  ;;  %v54_v41 = vsel %vm39_vm2, %v49_v40, %v1638_v0  ;;  %v64_v24 = vsel %vm34_vm1, %v1197_v23, %v1638_v0  ;;  %v1198_v25 = vld [vmem:[%s1864_s2 + $0x6] sm:$0x3] }
  0x1e   :  { %1443 = vmatprep.subr.bf16.mxu0 %v1442_v20  ;;  %1472 = vmatprep.subr.bf16.mxu1 %v1604_v1  ;;  %v79_v27 = vsel %vm34_vm1, %v1198_v25, %v1638_v0 }
  0x1f   :  { %v84_v28 = vsel %vm39_vm2, %v79_v27, %v1638_v0 }
  0x20   :  { %1344 = vmatmul.mubr.f32.vlgmr.msra.gmra.mrb[0].mxu1 %v1606_v2 }
  0x21   :  { %1445 = vmatpush3.bf16.msra.mxu0 %v1442_v20  ;;  %1474 = vmatpush3.bf16.msra.mxu1 %v1659_v13 }
  0x22   :  { %1447 = vmatprep.subr.bf16.mxu0 %v1446_v26  ;;  %1475 = vmatprep.subr.bf16.mxu1 %v1604_v1 }
  0x23   :  { %1354 = vmatprep.mubr.msk.f32.mxu1 %vm1605_vm0, %v1606_v2 }
  0x25   :  { %1449 = vmatpush3.bf16.msra.mxu0 %v1446_v26  ;;  %1477 = vmatpush3.bf16.msra.mxu1 %v1662_v19  ;;  %v69_v26 = vsel %vm39_vm2, %v64_v24, %v1638_v0 }
  0x26   :  { %1451 = vmatprep.subr.bf16.mxu0 %v1450_v29  ;;  %1478 = vmatprep.subr.bf16.mxu1 %v1604_v1 }
  0x29   :  { %1453 = vmatpush3.bf16.msra.mxu0 %v1450_v29 }
  0x2a   :  { %1455 = vmatprep.subr.bf16.mxu0 %v1454_v32 }
  0x2d   :  { %1457 = vmatpush3.bf16.msra.mxu0 %v1454_v32 }
  0x2e   :  { %1459 = vmatprep.subr.bf16.mxu0 %v1458_v35 }
  0x31   :  { %1461 = vmatpush3.bf16.msra.mxu0 %v1458_v35 }
  0x32   :  { %1463 = vmatprep.subr.bf16.mxu0 %v1462_v38 }
  0x35   :  { %1465 = vmatpush3.bf16.msra.mxu0 %v1462_v38 }
  0x36   :  { %1496 = vmatprep.subr.bf16.mxu0 %v1604_v1 }
  0x38   :  { %1324 = vmatmul.mubr.f32.vlgmr.msra.gmra.mrb[0].mxu0 %v54_v41 }
  0x39   :  { %1498 = vmatpush3.bf16.msra.mxu0 %v1659_v13  ;;  %1326 = vmatprep.mubr.f32.mxu0 %v69_v26 }
  0x3a   :  { %1499 = vmatprep.subr.bf16.mxu0 %v1604_v1 }
  0x3c   :  { %1327 = vmatmul.mubr.f32.gmra.mrb[2].mxu0 %v84_v28 }
  0x3d   :  { %1501 = vmatpush3.bf16.msra.mxu0 %v1662_v19 }
  0x3e   :  { %1508 = vmatprep.subr.bf16.mxu0 %v1604_v1 }
  0xf3   :  { %v370_v43 = vpop.f32.mrb[0].mxu1 }
  0xf4   :  { %v371_v44 = vadd.f32 %v1702_v42, %v370_v43  ;;  %v1345_v45 = vpop.f32.mrb[1].mxu1 }
  0xf6   :  { %382 = vrot.lane.b32.xlu0 %v371_v44, %s1607_s9 }
 0x10b   :  { %v1325_v46 = vpop.f32.mrb[0].mxu0 }
 0x10c   :  { %v261_v47 = vpop.f32.mrb[1].mxu0  ;;  %v267_v8 = vadd.f32 %v1325_v46, %v1709_v48 }
 0x10d   :  { %v262_v49 = vadd.f32 %v1709_v48, %v261_v47 }
 0x10f   :  { %v374_v50 = vadd.f32 %v371_v44, %v262_v49  ;;  %v1328_v33 = vpop.f32.mrb[2].mxu0 }
 0x110   :  { %v271_v34 = vpop.f32.mrb[3].mxu0 }
 0x111   :  { %v1206_v51 = vmul.f32 -1.442695, %v374_v50  ;;  %v272_v38 = vadd.f32 %v1709_v48, %v271_v34 }
 0x113   :  { %1529 = vpow2.f32 %v1206_v51 }
 0x11d   :  { %v1530_v52 = vpop.eup %1529 }
 0x11e   :  { %v378_v53 = vadd.f32 1.0, %v1530_v52 }
 0x120   :  { %1531 = vrcp.f32 %v378_v53 }
 0x12a   :  { %v1532_v54 = vpop.eup %1531 }
 0x168   :  { %v383_v55 = vpop.permute.xlu0 %382 }
 0x169   :  { %v385_v56 = vmul.f32 %v1532_v54, %v383_v55 }
 0x16b   :  { %387 = vrot.lane.b32.xlu0 %v385_v56, %s1608_s12 }
 0x1dd   :  { %v388_v57 = vpop.permute.xlu0 %387 }
 0x1de   :  { %v390_v58 = vadd.f32 %v388_v57, %v262_v49 }
 0x1e0   :  { %1533 = vtanh.f32 %v390_v58 }
 0x1ea   :  { %v1534_v59 = vpop.eup %1533 }
 0x1eb   :  { %v392_v60 = vsub.f32 0.0, %v1534_v59 }
 0x1ed   :  { %394 = vrot.lane.b32.xlu1 %v392_v60, %s1609_s13 }
 0x25f   :  { %v395_v61 = vpop.permute.xlu1 %394 }
 0x260   :  { %v397_v62 = vmul.f32 %v1532_v54, %v395_v61 }
 0x262   :  { %399 = vrot.lane.b32.xlu1 %v397_v62, %s1609_s13 }
 0x2d4   :  { %v400_v63 = vpop.permute.xlu1 %399 }
 0x2d5   :  { %v402_v3 = vadd.f32 %v1534_v59, %v400_v63  ;;  %v277_v59 = vadd.f32 %v1328_v33, %v1709_v48 }
 0x2d7   :  { %1355 = vmatmul.mubr.msk.f32.vlgmr.msra.gmra.mrb[2].mxu1 %vm300_vm3, %v402_v3 }
 0x2d8   :  { %1480 = vmatpush3.bf16.msra.mxu1 %v1659_v13  ;;  %1365 = vmatprep.mubr.msk.f32.mxu1 %vm1605_vm0, %v1606_v2 }
 0x2d9   :  { %1481 = vmatprep.subr.bf16.mxu1 %v1604_v1 }
 0x2dc   :  { %1483 = vmatpush3.bf16.msra.mxu1 %v1662_v19 }
 0x2dd   :  { %1484 = vmatprep.subr.bf16.mxu1 %v1604_v1 }
 0x3aa   :  { %v472_v4 = vpop.f32.mrb[2].mxu1 }
 0x3ab   :  { %v473_v5 = vadd.f32 %v1702_v42, %v472_v4  ;;  %v1356_v6 = vpop.f32.mrb[3].mxu1 }
 0x3ad   :  { %484 = vrot.lane.b32.xlu0 %v473_v5, %s1607_s9  ;;  %v476_v9 = vadd.f32 %v473_v5, %v267_v8 }
 0x3af   :  { %v1208_v10 = vmul.f32 -1.442695, %v476_v9 }
 0x3b1   :  { %1535 = vpow2.f32 %v1208_v10 }
 0x3bb   :  { %v1536_v11 = vpop.eup %1535 }
 0x3bc   :  { %v480_v14 = vadd.f32 1.0, %v1536_v11  ;;  %v1199_v11 = vld [vmem:[%s1864_s2 + $0x8] sm:$0x3] }
 0x3be   :  { %1537 = vrcp.f32 %v480_v14  ;;  %v94_v14 = vsel %vm34_vm1, %v1199_v11, %v1638_v0 }
 0x3c8   :  { %v1538_v15 = vpop.eup %1537 }
 0x41f   :  { %v485_v16 = vpop.permute.xlu0 %484 }
 0x420   :  { %v487_v17 = vmul.f32 %v1538_v15, %v485_v16  ;;  %v99_v16 = vsel %vm39_vm2, %v94_v14, %v1638_v0 }
 0x421   :  { %1329 = vmatprep.mubr.f32.mxu0 %v99_v16 }
 0x422   :  { %489 = vrot.lane.b32.xlu1 %v487_v17, %s1608_s12 }
 0x494   :  { %v490_v18 = vpop.permute.xlu1 %489 }
 0x495   :  { %v492_v20 = vadd.f32 %v490_v18, %v267_v8 }
 0x497   :  { %1539 = vtanh.f32 %v492_v20 }
 0x4a1   :  { %v1540_v21 = vpop.eup %1539 }
 0x4a2   :  { %v494_v22 = vsub.f32 %v402_v3, %v1540_v21 }
 0x4a4   :  { %496 = vrot.lane.b32.xlu0 %v494_v22, %s1609_s13 }
 0x516   :  { %v497_v29 = vpop.permute.xlu0 %496 }
 0x517   :  { %v499_v30 = vmul.f32 %v1538_v15, %v497_v29  ;;  %v1200_v15 = vld [vmem:[%s1864_s2 + $0xa] sm:$0x3] }
 0x518   :  { %v109_v17 = vsel %vm34_vm1, %v1200_v15, %v1638_v0 }
 0x519   :  { %501 = vrot.lane.b32.xlu1 %v499_v30, %s1609_s13  ;;  %v114_v18 = vsel %vm39_vm2, %v109_v17, %v1638_v0 }
 0x51a   :  { %1330 = vmatmul.mubr.f32.gmra.mrb[4].mxu0 %v114_v18 }
 0x58b   :  { %v502_v31 = vpop.permute.xlu1 %501 }
 0x58c   :  { %v504_v32 = vadd.f32 %v1540_v21, %v502_v31 }
 0x58e   :  { %1366 = vmatmul.mubr.msk.f32.vlgmr.msra.gmra.mrb[4].mxu1 %vm300_vm3, %v504_v32 }
 0x58f   :  { %1486 = vmatpush3.bf16.msra.mxu1 %v1659_v13  ;;  %1376 = vmatprep.mubr.msk.f32.mxu1 %vm1605_vm0, %v1606_v2 }
 0x590   :  { %1487 = vmatprep.subr.bf16.mxu1 %v1604_v1 }
 0x593   :  { %1489 = vmatpush3.bf16.msra.mxu1 %v1662_v19 }
 0x594   :  { %1490 = vmatprep.subr.bf16.mxu1 %v1604_v1 }
 0x5ed   :  { %v1331_v24 = vpop.f32.mrb[4].mxu0 }
 0x5ee   :  { %v281_v25 = vpop.f32.mrb[5].mxu0 }
 0x5ef   :  { %v282_v29 = vadd.f32 %v1709_v48, %v281_v25 }
 0x661   :  { %v574_v35 = vpop.f32.mrb[4].mxu1 }
 0x662   :  { %v575_v36 = vadd.f32 %v1702_v42, %v574_v35  ;;  %v1367_v37 = vpop.f32.mrb[5].mxu1 }
 0x664   :  { %586 = vrot.lane.b32.xlu0 %v575_v36, %s1607_s9  ;;  %v578_v39 = vadd.f32 %v575_v36, %v272_v38 }
 0x666   :  { %v1210_v40 = vmul.f32 -1.442695, %v578_v39  ;;  %v1201_v39 = vld [vmem:[%s1864_s2 + $0xc] sm:$0x3] }
 0x668   :  { %1541 = vpow2.f32 %v1210_v40  ;;  %v1202_v40 = vld [vmem:[%s1864_s2 + $0xe] sm:$0x3] }
 0x672   :  { %v1542_v41 = vpop.eup %1541 }
 0x673   :  { %v582_v43 = vadd.f32 1.0, %v1542_v41  ;;  %v124_v41 = vsel %vm34_vm1, %v1201_v39, %v1638_v0 }
 0x675   :  { %1543 = vrcp.f32 %v582_v43  ;;  %v139_v43 = vsel %vm34_vm1, %v1202_v40, %v1638_v0 }
 0x67f   :  { %v1544_v44 = vpop.eup %1543 }
 0x6d6   :  { %v587_v45 = vpop.permute.xlu0 %586 }
 0x6d7   :  { %v589_v46 = vmul.f32 %v1544_v44, %v587_v45  ;;  %v144_v45 = vsel %vm39_vm2, %v139_v43, %v1638_v0 }
 0x6d9   :  { %591 = vrot.lane.b32.xlu1 %v589_v46, %s1608_s12 }
 0x74b   :  { %v592_v47 = vpop.permute.xlu1 %591 }
 0x74c   :  { %v594_v49 = vadd.f32 %v592_v47, %v272_v38 }
 0x74e   :  { %1545 = vtanh.f32 %v594_v49 }
 0x758   :  { %v1546_v50 = vpop.eup %1545 }
 0x759   :  { %v596_v51 = vsub.f32 %v504_v32, %v1546_v50 }
 0x75b   :  { %598 = vrot.lane.b32.xlu0 %v596_v51, %s1609_s13 }
 0x7cd   :  { %v599_v52 = vpop.permute.xlu0 %598 }
 0x7ce   :  { %v601_v53 = vmul.f32 %v1544_v44, %v599_v52  ;;  %v129_v44 = vsel %vm39_vm2, %v124_v41, %v1638_v0 }
 0x7cf   :  { %1332 = vmatprep.mubr.f32.mxu0 %v129_v44  ;;  %v169_v44 = vld [vmem:[#allocation7 + $0xa8] sm:$0xff] }
 0x7d0   :  { %603 = vrot.lane.b32.xlu1 %v601_v53, %s1609_s13  ;;  %1333 = vmatmul.mubr.f32.gmra.mrb[6].mxu0 %v144_v45  ;;  %v170_v45 = vld [vmem:[#allocation7 + $0xb0] sm:$0xff] }
 0x7d1   :  { %1398 = vmatprep.mubr.msk.f32.mxu0 %vm1605_vm0, %v1606_v2 }
 0x842   :  { %v604_v54 = vpop.permute.xlu1 %603 }
 0x843   :  { %v606_v55 = vadd.f32 %v1546_v50, %v604_v54 }
 0x845   :  { %1377 = vmatmul.mubr.msk.f32.vlgmr.msra.gmra.mrb[6].mxu1 %vm300_vm3, %v606_v55 }
 0x846   :  { %1492 = vmatpush3.bf16.msra.mxu1 %v1659_v13  ;;  %1387 = vmatprep.mubr.msk.f32.mxu1 %vm1605_vm0, %v1606_v2 }
 0x847   :  { %1493 = vmatprep.subr.bf16.mxu1 %v1604_v1 }
 0x84a   :  { %1495 = vmatpush3.bf16.msra.mxu1 %v1662_v19 }
 0x84b   :  { %1502 = vmatprep.subr.bf16.mxu1 %v1604_v1 }
 0x8a3   :  { %v1823_v50 = vpop.f32.mrb[6].mxu0 }
 0x8a4   :  { %v291_v51 = vpop.f32.mrb[7].mxu0 }
 0x8a5   :  { %v292_v14 = vadd.f32 %v1709_v48, %v291_v51 }
 0x918   :  { %v676_v56 = vpop.f32.mrb[6].mxu1 }
 0x919   :  { %v677_v57 = vadd.f32 %v1702_v42, %v676_v56  ;;  %v1378_v58 = vpop.f32.mrb[7].mxu1 }
 0x91b   :  { %688 = vrot.lane.b32.xlu0 %v677_v57, %s1607_s9  ;;  %v680_v60 = vadd.f32 %v677_v57, %v277_v59 }
 0x91d   :  { %v1212_v61 = vmul.f32 -1.442695, %v680_v60 }
 0x91f   :  { %1547 = vpow2.f32 %v1212_v61 }
 0x929   :  { %v1548_v62 = vpop.eup %1547 }
 0x92a   :  { %v684_v63 = vadd.f32 1.0, %v1548_v62 }
 0x92c   :  { %1549 = vrcp.f32 %v684_v63 }
 0x936   :  { %v1550_v3 = vpop.eup %1549 }
 0x98d   :  { %v689_v4 = vpop.permute.xlu0 %688 }
 0x98e   :  { %v691_v5 = vmul.f32 %v1550_v3, %v689_v4 }
 0x990   :  { %693 = vrot.lane.b32.xlu1 %v691_v5, %s1608_s12 }
 0xa02   :  { %v694_v6 = vpop.permute.xlu1 %693 }
 0xa03   :  { %v696_v8 = vadd.f32 %v694_v6, %v277_v59 }
 0xa05   :  { %1551 = vtanh.f32 %v696_v8 }
 0xa0f   :  { %v1552_v9 = vpop.eup %1551 }
 0xa10   :  { %v698_v10 = vsub.f32 %v606_v55, %v1552_v9  ;;  %v287_v55 = vadd.f32 %v1331_v24, %v1709_v48 }
 0xa12   :  { %700 = vrot.lane.b32.xlu0 %v698_v10, %s1609_s13 }
 0xa84   :  { %v701_v20 = vpop.permute.xlu0 %700 }
 0xa85   :  { %v703_v21 = vmul.f32 %v1550_v3, %v701_v20 }
 0xa87   :  { %705 = vrot.lane.b32.xlu1 %v703_v21, %s1609_s13 }
 0xaf9   :  { %v706_v22 = vpop.permute.xlu1 %705 }
 0xafa   :  { %v708_v23 = vadd.f32 %v1552_v9, %v706_v22 }
 0xafc   :  { %1388 = vmatmul.mubr.msk.f32.vlgmr.msra.gmra.mrb[8].mxu1 %vm300_vm3, %v708_v23 }
 0xafd   :  { %1504 = vmatpush3.bf16.msra.mxu1 %v1659_v13  ;;  %1409 = vmatprep.mubr.msk.f32.mxu1 %vm1605_vm0, %v1606_v2 }
 0xafe   :  { %1505 = vmatprep.subr.bf16.mxu1 %v1604_v1 }
 0xb01   :  { %1507 = vmatpush3.bf16.msra.mxu1 %v1662_v19 }
 0xb02   :  { %1514 = vmatprep.subr.bf16.mxu1 %v1604_v1 }
 0xbcf   :  { %v778_v26 = vpop.f32.mrb[8].mxu1 }
 0xbd0   :  { %v779_v27 = vadd.f32 %v1702_v42, %v778_v26  ;;  %v1389_v28 = vpop.f32.mrb[9].mxu1 }
 0xbd2   :  { %790 = vrot.lane.b32.xlu0 %v779_v27, %s1607_s9  ;;  %v782_v30 = vadd.f32 %v779_v27, %v282_v29 }
 0xbd4   :  { %v1214_v31 = vmul.f32 -1.442695, %v782_v30 }
 0xbd6   :  { %1553 = vpow2.f32 %v1214_v31 }
 0xbe0   :  { %v1554_v32 = vpop.eup %1553 }
 0xbe1   :  { %v786_v33 = vadd.f32 1.0, %v1554_v32 }
 0xbe3   :  { %1555 = vrcp.f32 %v786_v33  ;;  %v297_v33 = vadd.f32 %v1823_v50, %v1709_v48 }
 0xbed   :  { %v1556_v34 = vpop.eup %1555 }
 0xc44   :  { %v791_v35 = vpop.permute.xlu0 %790 }
 0xc45   :  { %v793_v36 = vmul.f32 %v1556_v34, %v791_v35 }
 0xc47   :  { %795 = vrot.lane.b32.xlu1 %v793_v36, %s1608_s12 }
 0xcb9   :  { %v796_v37 = vpop.permute.xlu1 %795 }
 0xcba   :  { %v798_v38 = vadd.f32 %v796_v37, %v282_v29 }
 0xcbc   :  { %1557 = vtanh.f32 %v798_v38 }
 0xcc6   :  { %v1558_v46 = vpop.eup %1557 }
 0xcc7   :  { %v800_v47 = vsub.f32 %v708_v23, %v1558_v46 }
 0xcc9   :  { %802 = vrot.lane.b32.xlu0 %v800_v47, %s1609_s13  ;;  %v171_v47 = vld [vmem:[#allocation7 + $0xb8] sm:$0xff] }
 0xcca   :  { %v1518_v48 = vpack.c.bf16 %v171_v47, %v170_v45 }
 0xd3b   :  { %v803_v49 = vpop.permute.xlu0 %802 }
 0xd3c   :  { %v805_v7 = vmul.f32 %v1556_v34, %v803_v49 }
 0xd3e   :  { %807 = vrot.lane.b32.xlu1 %v805_v7, %s1609_s13 }
 0xdb0   :  { %v808_v52 = vpop.permute.xlu1 %807 }
 0xdb1   :  { %v810_v53 = vadd.f32 %v1558_v46, %v808_v52 }
 0xdb3   :  { %1399 = vmatmul.mubr.msk.f32.vlgmr.msra.gmra.mrb[8].mxu0 %vm300_vm3, %v810_v53 }
 0xdb4   :  { %1510 = vmatpush3.bf16.msra.mxu0 %v1659_v13  ;;  %1420 = vmatprep.mubr.msk.f32.mxu0 %vm1605_vm0, %v1606_v2 }
 0xdb5   :  { %1511 = vmatprep.subr.bf16.mxu0 %v1604_v1 }
 0xdb8   :  { %1513 = vmatpush3.bf16.msra.mxu0 %v1662_v19 }
 0xe86   :  { %v880_v0 = vpop.f32.mrb[8].mxu0 }
 0xe87   :  { %v881_v12 = vadd.f32 %v1702_v42, %v880_v0  ;;  %v1400_v54 = vpop.f32.mrb[9].mxu0  ;;  %v1205_v0 = vld [vmem:[%s1863_s1 + $0x2] ss:$0 sm:$0xff] }
 0xe89   :  { %892 = vrot.lane.b32.xlu0 %v881_v12, %s1607_s9  ;;  %v884_v56 = vadd.f32 %v881_v12, %v287_v55 }
 0xe8b   :  { %v1216_v57 = vmul.f32 -1.442695, %v884_v56 }
 0xe8d   :  { %1559 = vpow2.f32 %v1216_v57 }
 0xe97   :  { %v1560_v58 = vpop.eup %1559 }
 0xe98   :  { %v888_v13 = vadd.f32 1.0, %v1560_v58 }
 0xe9a   :  { %1561 = vrcp.f32 %v888_v13 }
 0xea4   :  { %v1562_v59 = vpop.eup %1561 }
 0xefb   :  { %v893_v60 = vpop.permute.xlu0 %892 }
 0xefc   :  { %v895_v61 = vmul.f32 %v1562_v59, %v893_v60 }
 0xefe   :  { %897 = vrot.lane.b32.xlu1 %v895_v61, %s1608_s12 }
 0xf70   :  { %v898_v19 = vpop.permute.xlu1 %897 }
 0xf71   :  { %v900_v62 = vadd.f32 %v898_v19, %v287_v55 }
 0xf73   :  { %1563 = vtanh.f32 %v900_v62 }
 0xf7d   :  { %v1564_v63 = vpop.eup %1563 }
 0xf7e   :  { %v902_v3 = vsub.f32 %v810_v53, %v1564_v63 }
 0xf80   :  { %904 = vrot.lane.b32.xlu0 %v902_v3, %s1609_s13 }
 0xff2   :  { %v905_v4 = vpop.permute.xlu0 %904 }
 0xff3   :  { %v907_v5 = vmul.f32 %v1562_v59, %v905_v4 }
 0xff5   :  { %909 = vrot.lane.b32.xlu1 %v907_v5, %s1609_s13 }
0x1067   :  { %v910_v6 = vpop.permute.xlu1 %909 }
0x1068   :  { %v912_v8 = vadd.f32 %v1564_v63, %v910_v6 }
0x106a   :  { %1410 = vmatmul.mubr.msk.f32.vlgmr.msra.gmra.mrb[10].mxu1 %vm300_vm3, %v912_v8 }
0x106b   :  { %1431 = vmatprep.mubr.msk.f32.mxu1 %vm1605_vm0, %v1606_v2 }
0x113d   :  { %v982_v9 = vpop.f32.mrb[10].mxu1 }
0x113e   :  { %v983_v10 = vadd.f32 %v1702_v42, %v982_v9  ;;  %v1411_v11 = vpop.f32.mrb[11].mxu1 }
0x1140   :  { %994 = vrot.lane.b32.xlu0 %v983_v10, %s1607_s9  ;;  %v986_v15 = vadd.f32 %v983_v10, %v292_v14 }
0x1142   :  { %v1218_v16 = vmul.f32 -1.442695, %v986_v15 }
0x1144   :  { %1565 = vpow2.f32 %v1218_v16 }
0x114e   :  { %v1566_v17 = vpop.eup %1565 }
0x114f   :  { %v990_v18 = vadd.f32 1.0, %v1566_v17 }
0x1151   :  { %1567 = vrcp.f32 %v990_v18 }
0x115b   :  { %v1568_v20 = vpop.eup %1567 }
0x11b2   :  { %v995_v21 = vpop.permute.xlu0 %994 }
0x11b3   :  { %v997_v22 = vmul.f32 %v1568_v20, %v995_v21 }
0x11b5   :  { %999 = vrot.lane.b32.xlu1 %v997_v22, %s1608_s12 }
0x1227   :  { %v1000_v2 = vpop.permute.xlu1 %999 }
0x1228   :  { %v1002_v23 = vadd.f32 %v1000_v2, %v292_v14 }
0x122a   :  { %1569 = vtanh.f32 %v1002_v23 }
0x1234   :  { %v1570_v24 = vpop.eup %1569 }
0x1235   :  { %v1004_v25 = vsub.f32 %v912_v8, %v1570_v24 }
0x1237   :  { %1006 = vrot.lane.b32.xlu0 %v1004_v25, %s1609_s13 }
0x12a9   :  { %v1007_v26 = vpop.permute.xlu0 %1006 }
0x12aa   :  { %v1009_v27 = vmul.f32 %v1568_v20, %v1007_v26 }
0x12ac   :  { %1011 = vrot.lane.b32.xlu1 %v1009_v27, %s1609_s13 }
0x131e   :  { %v1012_v28 = vpop.permute.xlu1 %1011 }
0x131f   :  { %v1014_v29 = vadd.f32 %v1570_v24, %v1012_v28 }
0x1321   :  { %1421 = vmatmul.mubr.msk.f32.vlgmr.msra.gmra.mrb[10].mxu0 %vm300_vm3, %v1014_v29 }
0x13f4   :  { %v1084_v30 = vpop.f32.mrb[10].mxu0 }
0x13f5   :  { %v1085_v31 = vadd.f32 %v1702_v42, %v1084_v30  ;;  %v1422_v32 = vpop.f32.mrb[11].mxu0  ;;  %v168_v42 = vld [vmem:[#allocation7 + $0xa0] sm:$0xff] }
0x13f6   :  { %v1515_v46 = vpack.c.bf16 %v169_v44, %v168_v42 }
0x13f7   :  { %1096 = vrot.lane.b32.xlu0 %v1085_v31, %s1607_s9  ;;  %v1088_v34 = vadd.f32 %v1085_v31, %v297_v33 }
0x13f8   :  { %1516 = vmatpush3.bf16.msra.mxu1 %v1515_v46 }
0x13f9   :  { %v1220_v35 = vmul.f32 -1.442695, %v1088_v34  ;;  %1517 = vmatprep.subr.bf16.mxu1 %v1604_v1 }
0x13fb   :  { %1571 = vpow2.f32 %v1220_v35 }
0x13fc   :  { %1519 = vmatpush3.bf16.msra.mxu1 %v1518_v48 }
0x1405   :  { %v1572_v36 = vpop.eup %1571 }
0x1406   :  { %v1092_v37 = vadd.f32 1.0, %v1572_v36 }
0x1408   :  { %1573 = vrcp.f32 %v1092_v37 }
0x1412   :  { %v1574_v38 = vpop.eup %1573 }
0x1469   :  { %v1097_v39 = vpop.permute.xlu0 %1096 }
0x146a   :  { %v1099_v40 = vmul.f32 %v1574_v38, %v1097_v39 }
0x146c   :  { %1101 = vrot.lane.b32.xlu1 %v1099_v40, %s1608_s12 }
0x14de   :  { %v1102_v41 = vpop.permute.xlu1 %1101 }
0x14df   :  { %v1104_v43 = vadd.f32 %v1102_v41, %v297_v33 }
0x14e1   :  { %1575 = vtanh.f32 %v1104_v43 }
0x14eb   :  { %v1576_v49 = vpop.eup %1575 }
0x14ec   :  { %v1106_v7 = vsub.f32 %v1014_v29, %v1576_v49 }
0x14ee   :  { %1108 = vrot.lane.b32.xlu0 %v1106_v7, %s1609_s13 }
0x1560   :  { %v1109_v50 = vpop.permute.xlu0 %1108 }
0x1561   :  { %v1111_v51 = vmul.f32 %v1574_v38, %v1109_v50 }
0x1563   :  { %1113 = vrot.lane.b32.xlu1 %v1111_v51, %s1609_s13 }
0x15d5   :  { %v1114_v52 = vpop.permute.xlu1 %1113 }
0x15d6   :  { %v1116_v53 = vadd.f32 %v1576_v49, %v1114_v52 }
0x15d8   :  { %1432 = vmatmul.mubr.msk.f32.vlgmr.msra.gmra.mrb[12].mxu1 %vm300_vm3, %v1116_v53 }
0x16ab   :  { %v1186_v12 = vpop.f32.mrb[12].mxu1 }
0x16ac   :  { %v1187_v54 = vadd.f32 %v1205_v0, %v1186_v12  ;;  %v1433_v1 = vpop.f32.mrb[13].mxu1 }
0x16ae   :  { %1190 = vst [vmem:[%s1866_s4] sm:$0xff] %v1187_v54 }
0x16af   :  { %1195 = vsyncpa [#allocation8], 1 }

</bundles_post_ra>
